<compile_context>
chip_gen: v7x
topology: tpu7x:2x2x1
jax: 0.10.0
libtpu: 0.0.40
codegen_flags: <defaults>
</compile_context>

<pallas_src>
import jax
import jax.numpy as jnp
from jax.experimental import pallas as pl
from jax.experimental.pallas import tpu as pltpu


def _round_up(a, b):
    return ((a + b - 1) // b) * b


def _conv_stats_fused(x, w, *, padding):
    """stride-1 Conv2d (bias-free) fused with per-image BN partial statistics.

    Returns:
      y    : (N, Cout, Hout*Wx) f32 conv output in "flat conv" layout (each output
             row carries Wx columns; the last Wx-Wout of them are wrap garbage).
      sums : (N, Cout, 1) f32 per-image per-channel sum   (wrap columns excluded)
      ssqs : (N, Cout, 1) f32 per-image per-channel sumsq (wrap columns excluded)
    """
    N, Cin, H, W = x.shape
    Cout, _, kH, kW = w.shape
    Hx, Wx = H + 2 * padding, W + 2 * padding
    Hout, Wout = Hx - kH + 1, Wx - kW + 1
    L = Hout * Wx                      # lanes per image in the flat-conv layout
    Lx = Hx * Wx + (kW - 1)            # flat input length (+tail keeps every tap slice in bounds)
    T = kH * kW

    xp = jnp.pad(x, ((0, 0), (0, 0), (padding, padding), (padding, padding)))
    x_flat = jnp.pad(xp.reshape(N, Cin, Hx * Wx),
                     ((0, 0), (0, 0), (0, kW - 1))).astype(jnp.bfloat16)
    # per-tap weights, tap-major: (kH*kW, Cout, Cin)
    w_taps = w.transpose(2, 3, 0, 1).reshape(T, Cout, Cin).astype(jnp.bfloat16)

    def kernel(x_ref, w_ref, y_ref, sum_ref, ssq_ref):
        acc = None
        for t in range(T):                                   # unrolled: kH*kW static taps
            start = (t // kW) * Wx + (t % kW)
            xs = x_ref[0, :, start:start + L]                # (Cin, L) bf16 static lane slice
            d = jnp.dot(w_ref[t], xs, preferred_element_type=jnp.float32)
            acc = d if acc is None else acc + d              # (Cout, L) f32
        y_ref[0] = acc
        # Exclude the (Wx - Wout) wrap columns of each output row from the BN stats.
        col = jax.lax.broadcasted_iota(jnp.int32, (1, L), 1)
        yv = jnp.where((col % Wx) < Wout, acc, 0.0)
        sum_ref[0] = jnp.sum(yv, axis=1, keepdims=True)      # (Cout, 1)
        ssq_ref[0] = jnp.sum(yv * yv, axis=1, keepdims=True)

    return pl.pallas_call(
        kernel,
        out_shape=(
            jax.ShapeDtypeStruct((N, Cout, L), jnp.float32),
            jax.ShapeDtypeStruct((N, Cout, 1), jnp.float32),
            jax.ShapeDtypeStruct((N, Cout, 1), jnp.float32),
        ),
        grid=(N,),
        in_specs=[
            pl.BlockSpec((1, Cin, Lx), lambda n: (n, 0, 0)),
            pl.BlockSpec((T, Cout, Cin), lambda n: (0, 0, 0)),
        ],
        out_specs=(
            pl.BlockSpec((1, Cout, L), lambda n: (n, 0, 0)),
            pl.BlockSpec((1, Cout, 1), lambda n: (n, 0, 0)),
            pl.BlockSpec((1, Cout, 1), lambda n: (n, 0, 0)),
        ),
        compiler_params=pltpu.CompilerParams(dimension_semantics=("parallel",)),
    )(x_flat, w_taps)


def _conv_stats_im2col(x, w, *, stride, padding, tile_m=512):
    """General-stride fallback: lane-dense transposed im2col GEMM, tiled over M."""
    N, Cin, H, W = x.shape
    Cout, _, kH, kW = w.shape
    Hout = (H + 2 * padding - kH) // stride + 1
    Wout = (W + 2 * padding - kW) // stride + 1
    M, K = N * Hout * Wout, Cin * kH * kW

    xp = jnp.pad(x, ((0, 0), (0, 0), (padding, padding), (padding, padding)))
    taps = [xp[:, :, kh:kh + stride * Hout:stride, kw:kw + stride * Wout:stride]
            for kh in range(kH) for kw in range(kW)]          # each (N, Cin, Hout, Wout)
    # K ordered (cin, kh, kw) to match w.reshape(Cout, K); columns ordered (n, ho, wo).
    p = jnp.stack(taps, axis=0).transpose(2, 0, 1, 3, 4).reshape(K, M)

    tm = max(128, min(tile_m, _round_up(M, 128)))
    Mp = _round_up(M, tm)
    G = Mp // tm
    p = jnp.pad(p, ((0, 0), (0, Mp - M))).astype(jnp.bfloat16)  # zero cols -> 0 in stats
    w2 = w.reshape(Cout, K).astype(jnp.bfloat16)

    def kernel(w_ref, p_ref, y_ref, sum_ref, ssq_ref):
        y = jnp.dot(w_ref[...], p_ref[...], preferred_element_type=jnp.float32)
        y_ref[0] = y
        sum_ref[0] = jnp.sum(y, axis=1, keepdims=True)
        ssq_ref[0] = jnp.sum(y * y, axis=1, keepdims=True)

    return pl.pallas_call(
        kernel,
        out_shape=(
            jax.ShapeDtypeStruct((G, Cout, tm), jnp.float32),
            jax.ShapeDtypeStruct((G, Cout, 1), jnp.float32),
            jax.ShapeDtypeStruct((G, Cout, 1), jnp.float32),
        ),
        grid=(G,),
        in_specs=[
            pl.BlockSpec((Cout, K), lambda i: (0, 0)),
            pl.BlockSpec((K, tm), lambda i: (0, i)),
        ],
        out_specs=(
            pl.BlockSpec((1, Cout, tm), lambda i: (i, 0, 0)),
            pl.BlockSpec((1, Cout, 1), lambda i: (i, 0, 0)),
            pl.BlockSpec((1, Cout, 1), lambda i: (i, 0, 0)),
        ),
        compiler_params=pltpu.CompilerParams(dimension_semantics=("parallel",)),
    )(w2, p)


def _bn_elu(y, scale, shift):
    """Pass 2: per-channel affine (already folded with batch mean/var) + ELU."""
    B, C, L = y.shape

    def kernel(y_ref, scale_ref, shift_ref, o_ref):
        v = y_ref[0] * scale_ref[...] + shift_ref[...]
        o_ref[0] = jnp.where(v > 0, v, jnp.expm1(jnp.minimum(v, 0.0)))

    return pl.pallas_call(
        kernel,
        out_shape=jax.ShapeDtypeStruct((B, C, L), jnp.float32),
        grid=(B,),
        in_specs=[
            pl.BlockSpec((1, C, L), lambda b: (b, 0, 0)),
            pl.BlockSpec((C, 1), lambda b: (0, 0)),
            pl.BlockSpec((C, 1), lambda b: (0, 0)),
        ],
        out_specs=pl.BlockSpec((1, C, L), lambda b: (b, 0, 0)),
        compiler_params=pltpu.CompilerParams(dimension_semantics=("parallel",)),
    )(y, scale, shift)


def conv_block_forward(x, w, b, gamma, beta, *, stride=1, padding=0):
    """x: (N, Cin, H, W) f32 NCHW. Returns (N, Cout, Hout, Wout) f32.

    `b` (conv bias) is accepted for API parity but never used: under training-mode
    BatchNorm the per-channel bias cancels exactly in (y - mean) and does not
    affect the variance, so the output is bit-for-bit the same without it.
    """
    del b  # cancels under batch-stat BatchNorm
    N, Cin, H, W = x.shape
    Cout, _, kH, kW = w.shape
    Hout = (H + 2 * padding - kH) // stride + 1
    Wout = (W + 2 * padding - kW) // stride + 1
    count = N * Hout * Wout
    eps = 1e-5

    if stride == 1:
        y, sums, ssqs = _conv_stats_fused(x, w, padding=padding)
    else:
        y, sums, ssqs = _conv_stats_im2col(x, w, stride=stride, padding=padding)

    # Tiny cross-tile stat combine (keeps BN stats global & cross-core safe),
    # then fold mean/var/gamma/beta into a per-channel scale + shift.
    gamma32 = gamma.astype(jnp.float32)
    beta32 = beta.astype(jnp.float32)
    mean = jnp.sum(sums, axis=0)[:, 0] / count
    var = jnp.maximum(jnp.sum(ssqs, axis=0)[:, 0] / count - mean * mean, 0.0)
    inv = jax.lax.rsqrt(var + eps)
    scale = (gamma32 * inv).reshape(Cout, 1)
    shift = (beta32 - mean * gamma32 * inv).reshape(Cout, 1)

    out = _bn_elu(y, scale, shift)

    if stride == 1:
        Wx = W + 2 * padding
        return out.reshape(N, Cout, Hout, Wx)[:, :, :, :Wout]     # drop wrap columns
    flat = out.transpose(1, 0, 2).reshape(Cout, -1)[:, :count]
    return flat.reshape(Cout, N, Hout, Wout).transpose(1, 0, 2, 3)


def _reference(x, w, b, gamma, beta, *, stride, padding):
    y = jax.lax.conv_general_dilated(
        x, w, window_strides=(stride, stride),
        padding=[(padding, padding), (padding, padding)],
        dimension_numbers=("NCHW", "OIHW", "NCHW"),
        precision=jax.lax.Precision.HIGHEST)
    y = y + b.reshape(1, -1, 1, 1)
    mean = jnp.mean(y, axis=(0, 2, 3), keepdims=True)
    var = jnp.mean((y - mean) ** 2, axis=(0, 2, 3), keepdims=True)
    y = (y - mean) * jax.lax.rsqrt(var + 1e-5)
    y = y * gamma.reshape(1, -1, 1, 1) + beta.reshape(1, -1, 1, 1)
    return jnp.where(y > 0, y, jnp.expm1(y))


if __name__ == "__main__":
    # ConvBlock(in_channels=4, out_channels=8, kernel_size=3, stride=1, padding=1)
    N, Cin, H, W = 2, 4, 16, 16
    Cout, k, stride, padding = 8, 3, 1, 1

    key = jax.random.PRNGKey(0)
    kx, kw_key, kb = jax.random.split(key, 3)

    x = jax.random.normal(kx, (N, Cin, H, W), dtype=jnp.float32)

    fan_in = Cin * k * k
    bound = 1.0 / (fan_in ** 0.5)
    w = jax.random.uniform(kw_key, (Cout, Cin, k, k), minval=-bound, maxval=bound,
                           dtype=jnp.float32)
    b = jax.random.uniform(kb, (Cout,), minval=-bound, maxval=bound, dtype=jnp.float32)
    gamma = jnp.ones((Cout,), jnp.float32)
    beta = jnp.zeros((Cout,), jnp.float32)

    out = jax.block_until_ready(
        conv_block_forward(x, w, b, gamma, beta, stride=stride, padding=padding))

    # Reference on the same bf16-rounded conv inputs the kernel feeds the MXU
    # (f32 accumulation on both sides; conv bias included in the reference — it cancels).
    x_r = x.astype(jnp.bfloat16).astype(jnp.float32)
    w_r = w.astype(jnp.bfloat16).astype(jnp.float32)
    ref = _reference(x_r, w_r, b, gamma, beta, stride=stride, padding=padding)

    assert out.shape == (N, Cout, H, W), out.shape
    assert jnp.allclose(out, ref, atol=1e-3, rtol=1e-3), float(jnp.max(jnp.abs(out - ref)))

    print("KERNEL_OK")
</pallas_src>

<mosaic_0001>
module attributes {stable_mosaic.version = 11 : i64} {
  func.func @kernel(%arg0: i32, %arg1: memref<1x4x326xbf16, #tpu.memory_space<vmem>>, %arg2: memref<9x8x4xbf16, #tpu.memory_space<vmem>>, %arg3: memref<1x8x288xf32, #tpu.memory_space<vmem>>, %arg4: memref<1x8x1xf32, #tpu.memory_space<vmem>>, %arg5: memref<1x8x1xf32, #tpu.memory_space<vmem>>) attributes {dimension_semantics = [#tpu.dimension_semantics<parallel>], iteration_bounds = array<i64: 2>, scalar_prefetch = 0 : i64, scratch_operands = 0 : i64, tpu.core_type = #tpu.core_type<tc>, window_params = [{transform_indices = @transform_0, window_bounds = array<i64: 1, 4, 326>}, {pipeline_mode = #tpu.pipeline_mode<synchronous>, transform_indices = @transform_1, window_bounds = array<i64: 9, 8, 4>}, {transform_indices = @transform_2, window_bounds = array<i64: 1, 8, 288>}, {transform_indices = @transform_3, window_bounds = array<i64: 1, 8, 1>}, {transform_indices = @transform_4, window_bounds = array<i64: 1, 8, 1>}]} {
    %c0 = arith.constant 0 : index
    %c0_0 = arith.constant 0 : index
    %c0_1 = arith.constant 0 : index
    %0 = vector.load %arg1[%c0, %c0_0, %c0_1] : memref<1x4x326xbf16, #tpu.memory_space<vmem>>, vector<1x4x288xbf16>
    %1 = vector.shape_cast %0 : vector<1x4x288xbf16> to vector<4x288xbf16>
    %c0_2 = arith.constant 0 : index
    %c0_3 = arith.constant 0 : index
    %c0_4 = arith.constant 0 : index
    %2 = vector.load %arg2[%c0_2, %c0_3, %c0_4] : memref<9x8x4xbf16, #tpu.memory_space<vmem>>, vector<1x8x4xbf16>
    %3 = vector.shape_cast %2 : vector<1x8x4xbf16> to vector<8x4xbf16>
    %cst = arith.constant dense<0.000000e+00> : vector<8x288xf32>
    %4 = tpu.matmul %3, %1, %cst {dimension_numbers = #tpu.dot_dimension_numbers<[1], [0], [0], [1], [0, 0, 1, 1], [], []>} : vector<8x4xbf16>, vector<4x288xbf16>, vector<8x288xf32> -> vector<8x288xf32>
    %c0_5 = arith.constant 0 : index
    %c0_6 = arith.constant 0 : index
    %c1 = arith.constant 1 : index
    %5 = vector.load %arg1[%c0_5, %c0_6, %c1] : memref<1x4x326xbf16, #tpu.memory_space<vmem>>, vector<1x4x288xbf16>
    %6 = vector.shape_cast %5 : vector<1x4x288xbf16> to vector<4x288xbf16>
    %c1_7 = arith.constant 1 : index
    %c0_8 = arith.constant 0 : index
    %c0_9 = arith.constant 0 : index
    %7 = vector.load %arg2[%c1_7, %c0_8, %c0_9] : memref<9x8x4xbf16, #tpu.memory_space<vmem>>, vector<1x8x4xbf16>
    %8 = vector.shape_cast %7 : vector<1x8x4xbf16> to vector<8x4xbf16>
    %cst_10 = arith.constant dense<0.000000e+00> : vector<8x288xf32>
    %9 = tpu.matmul %8, %6, %cst_10 {dimension_numbers = #tpu.dot_dimension_numbers<[1], [0], [0], [1], [0, 0, 1, 1], [], []>} : vector<8x4xbf16>, vector<4x288xbf16>, vector<8x288xf32> -> vector<8x288xf32>
    %10 = arith.addf %4, %9 : vector<8x288xf32>
    %c0_11 = arith.constant 0 : index
    %c0_12 = arith.constant 0 : index
    %c2 = arith.constant 2 : index
    %11 = vector.load %arg1[%c0_11, %c0_12, %c2] : memref<1x4x326xbf16, #tpu.memory_space<vmem>>, vector<1x4x288xbf16>
    %12 = vector.shape_cast %11 : vector<1x4x288xbf16> to vector<4x288xbf16>
    %c2_13 = arith.constant 2 : index
    %c0_14 = arith.constant 0 : index
    %c0_15 = arith.constant 0 : index
    %13 = vector.load %arg2[%c2_13, %c0_14, %c0_15] : memref<9x8x4xbf16, #tpu.memory_space<vmem>>, vector<1x8x4xbf16>
    %14 = vector.shape_cast %13 : vector<1x8x4xbf16> to vector<8x4xbf16>
    %cst_16 = arith.constant dense<0.000000e+00> : vector<8x288xf32>
    %15 = tpu.matmul %14, %12, %cst_16 {dimension_numbers = #tpu.dot_dimension_numbers<[1], [0], [0], [1], [0, 0, 1, 1], [], []>} : vector<8x4xbf16>, vector<4x288xbf16>, vector<8x288xf32> -> vector<8x288xf32>
    %16 = arith.addf %10, %15 : vector<8x288xf32>
    %c0_17 = arith.constant 0 : index
    %c0_18 = arith.constant 0 : index
    %c18 = arith.constant 18 : index
    %17 = vector.load %arg1[%c0_17, %c0_18, %c18] : memref<1x4x326xbf16, #tpu.memory_space<vmem>>, vector<1x4x288xbf16>
    %18 = vector.shape_cast %17 : vector<1x4x288xbf16> to vector<4x288xbf16>
    %c3 = arith.constant 3 : index
    %c0_19 = arith.constant 0 : index
    %c0_20 = arith.constant 0 : index
    %19 = vector.load %arg2[%c3, %c0_19, %c0_20] : memref<9x8x4xbf16, #tpu.memory_space<vmem>>, vector<1x8x4xbf16>
    %20 = vector.shape_cast %19 : vector<1x8x4xbf16> to vector<8x4xbf16>
    %cst_21 = arith.constant dense<0.000000e+00> : vector<8x288xf32>
    %21 = tpu.matmul %20, %18, %cst_21 {dimension_numbers = #tpu.dot_dimension_numbers<[1], [0], [0], [1], [0, 0, 1, 1], [], []>} : vector<8x4xbf16>, vector<4x288xbf16>, vector<8x288xf32> -> vector<8x288xf32>
    %22 = arith.addf %16, %21 : vector<8x288xf32>
    %c0_22 = arith.constant 0 : index
    %c0_23 = arith.constant 0 : index
    %c19 = arith.constant 19 : index
    %23 = vector.load %arg1[%c0_22, %c0_23, %c19] : memref<1x4x326xbf16, #tpu.memory_space<vmem>>, vector<1x4x288xbf16>
    %24 = vector.shape_cast %23 : vector<1x4x288xbf16> to vector<4x288xbf16>
    %c4 = arith.constant 4 : index
    %c0_24 = arith.constant 0 : index
    %c0_25 = arith.constant 0 : index
    %25 = vector.load %arg2[%c4, %c0_24, %c0_25] : memref<9x8x4xbf16, #tpu.memory_space<vmem>>, vector<1x8x4xbf16>
    %26 = vector.shape_cast %25 : vector<1x8x4xbf16> to vector<8x4xbf16>
    %cst_26 = arith.constant dense<0.000000e+00> : vector<8x288xf32>
    %27 = tpu.matmul %26, %24, %cst_26 {dimension_numbers = #tpu.dot_dimension_numbers<[1], [0], [0], [1], [0, 0, 1, 1], [], []>} : vector<8x4xbf16>, vector<4x288xbf16>, vector<8x288xf32> -> vector<8x288xf32>
    %28 = arith.addf %22, %27 : vector<8x288xf32>
    %c0_27 = arith.constant 0 : index
    %c0_28 = arith.constant 0 : index
    %c20 = arith.constant 20 : index
    %29 = vector.load %arg1[%c0_27, %c0_28, %c20] : memref<1x4x326xbf16, #tpu.memory_space<vmem>>, vector<1x4x288xbf16>
    %30 = vector.shape_cast %29 : vector<1x4x288xbf16> to vector<4x288xbf16>
    %c5 = arith.constant 5 : index
    %c0_29 = arith.constant 0 : index
    %c0_30 = arith.constant 0 : index
    %31 = vector.load %arg2[%c5, %c0_29, %c0_30] : memref<9x8x4xbf16, #tpu.memory_space<vmem>>, vector<1x8x4xbf16>
    %32 = vector.shape_cast %31 : vector<1x8x4xbf16> to vector<8x4xbf16>
    %cst_31 = arith.constant dense<0.000000e+00> : vector<8x288xf32>
    %33 = tpu.matmul %32, %30, %cst_31 {dimension_numbers = #tpu.dot_dimension_numbers<[1], [0], [0], [1], [0, 0, 1, 1], [], []>} : vector<8x4xbf16>, vector<4x288xbf16>, vector<8x288xf32> -> vector<8x288xf32>
    %34 = arith.addf %28, %33 : vector<8x288xf32>
    %c0_32 = arith.constant 0 : index
    %c0_33 = arith.constant 0 : index
    %c36 = arith.constant 36 : index
    %35 = vector.load %arg1[%c0_32, %c0_33, %c36] : memref<1x4x326xbf16, #tpu.memory_space<vmem>>, vector<1x4x288xbf16>
    %36 = vector.shape_cast %35 : vector<1x4x288xbf16> to vector<4x288xbf16>
    %c6 = arith.constant 6 : index
    %c0_34 = arith.constant 0 : index
    %c0_35 = arith.constant 0 : index
    %37 = vector.load %arg2[%c6, %c0_34, %c0_35] : memref<9x8x4xbf16, #tpu.memory_space<vmem>>, vector<1x8x4xbf16>
    %38 = vector.shape_cast %37 : vector<1x8x4xbf16> to vector<8x4xbf16>
    %cst_36 = arith.constant dense<0.000000e+00> : vector<8x288xf32>
    %39 = tpu.matmul %38, %36, %cst_36 {dimension_numbers = #tpu.dot_dimension_numbers<[1], [0], [0], [1], [0, 0, 1, 1], [], []>} : vector<8x4xbf16>, vector<4x288xbf16>, vector<8x288xf32> -> vector<8x288xf32>
    %40 = arith.addf %34, %39 : vector<8x288xf32>
    %c0_37 = arith.constant 0 : index
    %c0_38 = arith.constant 0 : index
    %c37 = arith.constant 37 : index
    %41 = vector.load %arg1[%c0_37, %c0_38, %c37] : memref<1x4x326xbf16, #tpu.memory_space<vmem>>, vector<1x4x288xbf16>
    %42 = vector.shape_cast %41 : vector<1x4x288xbf16> to vector<4x288xbf16>
    %c7 = arith.constant 7 : index
    %c0_39 = arith.constant 0 : index
    %c0_40 = arith.constant 0 : index
    %43 = vector.load %arg2[%c7, %c0_39, %c0_40] : memref<9x8x4xbf16, #tpu.memory_space<vmem>>, vector<1x8x4xbf16>
    %44 = vector.shape_cast %43 : vector<1x8x4xbf16> to vector<8x4xbf16>
    %cst_41 = arith.constant dense<0.000000e+00> : vector<8x288xf32>
    %45 = tpu.matmul %44, %42, %cst_41 {dimension_numbers = #tpu.dot_dimension_numbers<[1], [0], [0], [1], [0, 0, 1, 1], [], []>} : vector<8x4xbf16>, vector<4x288xbf16>, vector<8x288xf32> -> vector<8x288xf32>
    %46 = arith.addf %40, %45 : vector<8x288xf32>
    %c0_42 = arith.constant 0 : index
    %c0_43 = arith.constant 0 : index
    %c38 = arith.constant 38 : index
    %47 = vector.load %arg1[%c0_42, %c0_43, %c38] : memref<1x4x326xbf16, #tpu.memory_space<vmem>>, vector<1x4x288xbf16>
    %48 = vector.shape_cast %47 : vector<1x4x288xbf16> to vector<4x288xbf16>
    %c8 = arith.constant 8 : index
    %c0_44 = arith.constant 0 : index
    %c0_45 = arith.constant 0 : index
    %49 = vector.load %arg2[%c8, %c0_44, %c0_45] : memref<9x8x4xbf16, #tpu.memory_space<vmem>>, vector<1x8x4xbf16>
    %50 = vector.shape_cast %49 : vector<1x8x4xbf16> to vector<8x4xbf16>
    %cst_46 = arith.constant dense<0.000000e+00> : vector<8x288xf32>
    %51 = tpu.matmul %50, %48, %cst_46 {dimension_numbers = #tpu.dot_dimension_numbers<[1], [0], [0], [1], [0, 0, 1, 1], [], []>} : vector<8x4xbf16>, vector<4x288xbf16>, vector<8x288xf32> -> vector<8x288xf32>
    %52 = arith.addf %46, %51 : vector<8x288xf32>
    %c0_47 = arith.constant 0 : index
    %c0_48 = arith.constant 0 : index
    %c0_49 = arith.constant 0 : index
    %53 = vector.load %arg3[%c0_47, %c0_48, %c0_49] : memref<1x8x288xf32, #tpu.memory_space<vmem>>, vector<1x8x288xf32>
    %54 = vector.shape_cast %53 : vector<1x8x288xf32> to vector<8x288xf32>
    %55 = vector.shape_cast %52 : vector<8x288xf32> to vector<1x8x288xf32>
    tpu.vector_store %arg3[%c0_47, %c0_48, %c0_49], %55 {strides = array<i32>} : memref<1x8x288xf32, #tpu.memory_space<vmem>>, vector<1x8x288xf32>,
    %56 = tpu.iota {dimensions = array<i32: 1>} : vector<1x288xi32>
    %c18_i32 = arith.constant 18 : i32
    %c0_i32 = arith.constant 0 : i32
    %57 = arith.cmpi eq, %c18_i32, %c0_i32 : i32
    %c1_i32 = arith.constant 1 : i32
    %58 = arith.select %57, %c1_i32, %c18_i32 : i32
    %59 = vector.broadcast %58 : i32 to vector<1x288xi32>
    %60 = arith.remsi %56, %59 : vector<1x288xi32>
    %c0_i32_50 = arith.constant 0 : i32
    %61 = vector.broadcast %c0_i32_50 : i32 to vector<1x288xi32>
    %62 = arith.cmpi ne, %60, %61 : vector<1x288xi32>
    %c0_i32_51 = arith.constant 0 : i32
    %63 = vector.broadcast %c0_i32_51 : i32 to vector<1x288xi32>
    %64 = arith.cmpi slt, %60, %63 : vector<1x288xi32>
    %c0_i32_52 = arith.constant 0 : i32
    %65 = arith.cmpi slt, %58, %c0_i32_52 : i32
    %66 = vector.broadcast %65 : i1 to vector<1x288xi1>
    %67 = vector.broadcast %66 : vector<1x288xi1> to vector<1x288xi1>
    %68 = arith.xori %64, %67 : vector<1x288xi1>
    %69 = arith.andi %68, %62 : vector<1x288xi1>
    %70 = vector.broadcast %58 : i32 to vector<1x288xi32>
    %71 = arith.addi %60, %70 : vector<1x288xi32>
    %72 = arith.select %69, %71, %60 : vector<1x288xi1>, vector<1x288xi32>
    %c16_i32 = arith.constant 16 : i32
    %73 = vector.broadcast %c16_i32 : i32 to vector<1x288xi32>
    %74 = arith.cmpi slt, %72, %73 : vector<1x288xi32>
    %cst_53 = arith.constant 0.000000e+00 : f32
    %75 = vector.shape_cast %74 : vector<1x288xi1> to vector<1x288xi1>
    %76 = vector.broadcast %75 : vector<1x288xi1> to vector<8x288xi1>
    %77 = vector.broadcast %cst_53 : f32 to vector<8x288xf32>
    %78 = arith.select %76, %52, %77 : vector<8x288xi1>, vector<8x288xf32>
    %cst_54 = arith.constant dense<0.000000e+00> : vector<8xf32>
    %79 = vector.multi_reduction <add>, %78, %cst_54 [1] : vector<8x288xf32> to vector<8xf32>
    %80 = vector.shape_cast %79 : vector<8xf32> to vector<8x1xf32>
    %c0_55 = arith.constant 0 : index
    %c0_56 = arith.constant 0 : index
    %c0_57 = arith.constant 0 : index
    %81 = vector.load %arg4[%c0_55, %c0_56, %c0_57] : memref<1x8x1xf32, #tpu.memory_space<vmem>>, vector<1x8x1xf32>
    %82 = vector.shape_cast %81 : vector<1x8x1xf32> to vector<8x1xf32>
    %83 = vector.shape_cast %80 : vector<8x1xf32> to vector<1x8x1xf32>
    tpu.vector_store %arg4[%c0_55, %c0_56, %c0_57], %83 {strides = array<i32>} : memref<1x8x1xf32, #tpu.memory_space<vmem>>, vector<1x8x1xf32>,
    %84 = arith.mulf %78, %78 : vector<8x288xf32>
    %cst_58 = arith.constant dense<0.000000e+00> : vector<8xf32>
    %85 = vector.multi_reduction <add>, %84, %cst_58 [1] : vector<8x288xf32> to vector<8xf32>
    %86 = vector.shape_cast %85 : vector<8xf32> to vector<8x1xf32>
    %c0_59 = arith.constant 0 : index
    %c0_60 = arith.constant 0 : index
    %c0_61 = arith.constant 0 : index
    %87 = vector.load %arg5[%c0_59, %c0_60, %c0_61] : memref<1x8x1xf32, #tpu.memory_space<vmem>>, vector<1x8x1xf32>
    %88 = vector.shape_cast %87 : vector<1x8x1xf32> to vector<8x1xf32>
    %89 = vector.shape_cast %86 : vector<8x1xf32> to vector<1x8x1xf32>
    tpu.vector_store %arg5[%c0_59, %c0_60, %c0_61], %89 {strides = array<i32>} : memref<1x8x1xf32, #tpu.memory_space<vmem>>, vector<1x8x1xf32>,
    return
  }
  func.func @transform_0(%arg0: i32) -> (i32, i32, i32) {
    %c0_i32 = arith.constant 0 : i32
    %c0_i32_0 = arith.constant 0 : i32
    %c0_i32_1 = arith.constant 0 : i32
    return %arg0, %c0_i32, %c0_i32_0 : i32, i32, i32
  }
  func.func @transform_1(%arg0: i32) -> (i32, i32, i32) {
    %c0_i32 = arith.constant 0 : i32
    %c0_i32_0 = arith.constant 0 : i32
    %c0_i32_1 = arith.constant 0 : i32
    %c0_i32_2 = arith.constant 0 : i32
    return %c0_i32, %c0_i32_0, %c0_i32_1 : i32, i32, i32
  }
  func.func @transform_2(%arg0: i32) -> (i32, i32, i32) {
    %c0_i32 = arith.constant 0 : i32
    %c0_i32_0 = arith.constant 0 : i32
    %c0_i32_1 = arith.constant 0 : i32
    return %arg0, %c0_i32, %c0_i32_0 : i32, i32, i32
  }
  func.func @transform_3(%arg0: i32) -> (i32, i32, i32) {
    %c0_i32 = arith.constant 0 : i32
    %c0_i32_0 = arith.constant 0 : i32
    %c0_i32_1 = arith.constant 0 : i32
    return %arg0, %c0_i32, %c0_i32_0 : i32, i32, i32
  }
  func.func @transform_4(%arg0: i32) -> (i32, i32, i32) {
    %c0_i32 = arith.constant 0 : i32
    %c0_i32_0 = arith.constant 0 : i32
    %c0_i32_1 = arith.constant 0 : i32
    return %arg0, %c0_i32, %c0_i32_0 : i32, i32, i32
  }
}

</mosaic_0001>

<bundles_post_ra>
// kernel: tpu_custom_call.1
= control target key start
LH: loop header
LB: loop body
LE: loop exit
PB: predicated region body
PF: predicated region fallthrough
CT: control target
= control target key end

     0   :  { %10 = vsyncpa [#allocation3], 0  ;;  %s2163_s0 = inlined_call_operand.vmem [shape: bf16[2,4,326], index: 0, kind: input, shape index: {}]   ;;  %s2164_s1 = inlined_call_operand.vmem [shape: bf16[9,8,4], index: 1, kind: input, shape index: {}]   ;;  %s2165_s2 = inlined_call_operand.hbm [shape: f32[2,8,288], index: 2, kind: output, shape index: {0}]   ;;  %s2166_s3 = inlined_call_operand.vmem [shape: f32[2,8,1], index: 3, kind: output, shape index: {1}]   ;;  %s2167_s4 = inlined_call_operand.vmem [shape: f32[2,8,1], index: 4, kind: output, shape index: {2}]  }
   0x1   :  { %12 = vsyncpa [#allocation3 + $0x1], 0  ;;  %s1882_s15 = smov 0   ;;  %s1884_s16 = smov 0  }
   0x2   :  { %s1886_s17 = smov 0   ;;  %s1888_s18 = smov 0  }
   0x3 LB: > { %s1903_s19 = sadd.s32 4294967295, %s1842_s18   ;;  %s1531_s20 = sadd.s32 4294967294, %s1842_s18   ;;  %s1842_s18 = sphi %s1888_s18, %s2173_s18   ;;  %s1838_s17 = sphi %s1886_s17, %s2172_s17   ;;  %s1834_s16 = sphi %s1884_s16, %s2171_s16   ;;  %s1830_s15 = sphi %s1882_s15, %s2170_s15  }
   0x4   : > { %s1907_s21 = sadd.s32 1, %s1842_s18   ;;  %s72_s22 = sadd.s32 1, %s1838_s17 }
   0x5   : > { %s69_s23 = ssub.s32 %s1842_s18, %s1907_s21  ;;  %p82_p0 = scmp.ne.s32.totalorder %s1838_s17, %s1834_s16 }
   0x6   : > { %p70_p1 = scmp.eq.s32.totalorder %s69_s23, 0  ;;  %p83_p2 = scmp.eq.s32.totalorder %s1903_s19, 1 }
   0x7   : > { %p88_p3 = scmp.ne.s32.totalorder %s1834_s16, %s1830_s15  ;;  %p89_p4 = scmp.eq.s32.totalorder %s1531_s20, 1 }
   0x8   : > { %s1918_s24 = scalar_select %p70_p1, %s1838_s17, %s72_s22  }
   0x9   : > { %p1920_p5 = por %p83_p2, %p82_p0  ;;  %p1924_p6 = por %p89_p4, %p88_p3 }
   0xa   : > { %p1534_p7 = scmp.ge.s32.totalorder %s1842_s18, 1  ;;  %p170_p8 = scmp.lt.s32.totalorder %s1842_s18, 3 }
   0xc   : > { %p171_p9 = pnand %p1534_p7, %p170_p8 }
   0xd   : > { %p204_p10 = scmp.lt.s32.totalorder (!%p171_p9), %s1903_s19, 1  ;;  %v227_v0 = vlaneseq (!%p171_p9)  ;;  %v1844_v1 = vmov (!%p171_p9), 1983009808   ;;  %v1845_v3 = vmov (!%p171_p9), 0.0   ;;  %vm1846_vm0 = vmmov (!%p171_p9), 0   ;;  %s1848_s6 = smov (!%p171_p9), 127  }
   0xe   : > { %174 = sbr.rel (%p171_p9) target bundleno = 612 (0x264), region = 28  ;;  %v225_v2 = vunpack.c.l.s4 (!%p171_p9), %v1844_v1  ;;  %1594 = vmatprep.subr.bf16.mxu1 (!%p171_p9), %v1845_v3  ;;  %1596 = vmatprep.mubr.msk.bf16.mxu1 (!%p171_p9), %vm1846_vm0, %v1845_v3  ;;  %v1847_v6 = vmov (!%p171_p9), 0   ;;  %s1849_s7 = smov (!%p171_p9), 126   ;;  %vm252_vm1 = vcmask (!%p171_p9), 1041408   ;;  %vm245_vm2 = vcmask (!%p171_p9), 1039360  }
   0xf   : > { %v228_v4 = vshrl.u32 (!%p171_p9), %v227_v0, 7  ;;  %294 = vmatprep.mubr.bf16.mxu0 (!%p171_p9), %v1847_v6  ;;  %s1850_s8 = smov (!%p171_p9), 110   ;;  %s1851_s9 = smov (!%p171_p9), 109   ;;  %v1538_v52 = vld [vmem:[%s2164_s1 + $0x4] sm:$0xf] (!%p171_p9)  ;;  %vm248_vm3 = vcmask (!%p171_p9), 31744  }
  0x10   : > { %v226_v5 = vunpack.c.0.s8 (!%p171_p9), %v225_v2  ;;  %s1852_s10 = smov (!%p171_p9), 108   ;;  %s1853_s11 = smov (!%p171_p9), 92   ;;  %vm462_vm4 = vcmask (!%p171_p9), 1031168   ;;  %v219_v63 = vld [vmem:[%s2164_s1] sm:$0xf] (!%p171_p9)  ;;  %vm587_vm5 = vcmask (!%p171_p9), 900096  }
  0x11   : > { %s1854_s12 = smov (!%p171_p9), 91   ;;  %s1855_s13 = smov (!%p171_p9), 90   ;;  %vm712_vm6 = vcmask (!%p171_p9), 891904   ;;  %vm837_vm7 = vcmask (!%p171_p9), 883712   ;;  %vm962_vm8 = vcmask (!%p171_p9), 752640   ;;  %vm1087_vm9 = vcmask (!%p171_p9), 744448  }
  0x12   : > { %v1940_v7 = vsub.s32 (!%p171_p9), %v226_v5, %v228_v4  ;;  %vm1212_vm10 = vcmask (!%p171_p9), 736256   ;;  %s189_s22 = sand.u32 (!%p171_p9), 1, %s1834_s16   ;;  %s1720_s29 = smul.u32 (!%p171_p9), 384, %s1903_s19 }
  0x13   : > { %s1712_s23 = smul.u32 (!%p171_p9), 24, %s189_s22 }
  0x15   : > { %s1933_s27 = scalar_select %p204_p10, %s1903_s19, 1 }
  0x17   : > { %s1713_s28 = smul.u32 6, %s1933_s27 }
  0x19   : > { %s1945_s5 = scalar_lea.vmem %s2163_s0, %s1713_s28  ;;  %s2105_s28 = scalar_lea.vmem [#allocation2], %s1712_s23 }
  0x1a   : > { %v218_v8 = vld [vmem:[%s1945_s5] sm:$0x3f]  ;;  %s1418_s30 = sshll.u32 %s2105_s28, 4  ;;  %s1419_s30 = int_to_ptr.vmem [resolvable:$true] %s1418_s30 }
  0x1b   : > { %v1949_v9 = vrot.slane %v218_v8, %v1940_v7  ;;  %v223_v10 = vcombine.high %v218_v8, %v218_v8  ;;  %v436_v11 = vld [vmem:[%s1945_s5] sm:$0x3f] }
  0x1c   : > { %v447_v14 = vrot.slane %v436_v11, %v1940_v7  ;;  %v440_v15 = vcombine.high %v436_v11, %v436_v11  ;;  %v561_v17 = vld [vmem:[%s1945_s5] sm:$0x3f] }
  0x1d   : > { %239 = vrot.lane.b32.xlu0 %v1949_v9, %s1848_s6  ;;  %v1954_v12 = vrot.slane %v223_v10, %v1940_v7  ;;  %v1958_v13 = vcombine.high %v1949_v9, %v1949_v9  ;;  %v572_v19 = vrot.slane %v561_v17, %v1940_v7  ;;  %v565_v20 = vcombine.high %v561_v17, %v561_v17  ;;  %v686_v22 = vld [vmem:[%s1945_s5] sm:$0x3f]  ;;  %v1545_v10 = vld [vmem:[%s2164_s1 + $0x8] sm:$0xf] }
  0x1e   : > { %v455_v16 = vcombine.high %v447_v14, %v447_v14  ;;  %v454_v18 = vrot.slane %v440_v15, %v1940_v7  ;;  %v697_v24 = vrot.slane %v686_v22, %v1940_v7  ;;  %v690_v25 = vcombine.high %v686_v22, %v686_v22  ;;  %v811_v27 = vld [vmem:[%s1945_s5] sm:$0x3f] }
  0x1f   : > { %243 = vrot.lane.b32.xlu1 %v1954_v12, %s1848_s6  ;;  %v580_v21 = vcombine.high %v572_v19, %v572_v19  ;;  %v579_v23 = vrot.slane %v565_v20, %v1940_v7  ;;  %v822_v29 = vrot.slane %v811_v27, %v1940_v7  ;;  %v815_v30 = vcombine.high %v811_v27, %v811_v27  ;;  %v936_v32 = vld [vmem:[%s1945_s5] sm:$0x3f] }
  0x20   : > { %v705_v26 = vcombine.high %v697_v24, %v697_v24  ;;  %v704_v28 = vrot.slane %v690_v25, %v1940_v7  ;;  %v947_v34 = vrot.slane %v936_v32, %v1940_v7  ;;  %v940_v35 = vcombine.high %v936_v32, %v936_v32  ;;  %v1061_v37 = vld [vmem:[%s1945_s5] sm:$0x3f] }
  0x21   : > { %241 = vrot.lane.b32.xlu0 %v1958_v13, %s1848_s6  ;;  %v830_v31 = vcombine.high %v822_v29, %v822_v29  ;;  %v829_v33 = vrot.slane %v815_v30, %v1940_v7  ;;  %v1072_v39 = vrot.slane %v1061_v37, %v1940_v7  ;;  %v1065_v40 = vcombine.high %v1061_v37, %v1061_v37  ;;  %v1186_v42 = vld [vmem:[%s1945_s5] sm:$0x3f] }
  0x22   : > { %v955_v36 = vcombine.high %v947_v34, %v947_v34  ;;  %v954_v38 = vrot.slane %v940_v35, %v1940_v7  ;;  %v1197_v44 = vrot.slane %v1186_v42, %v1940_v7  ;;  %v1190_v45 = vcombine.high %v1186_v42, %v1186_v42  ;;  %v1561_v42 = vld [vmem:[%s2164_s1 + $0x18] sm:$0xf] }
  0x23   : > { %456 = vrot.lane.b32.xlu1 %v447_v14, %s1849_s7  ;;  %v1080_v41 = vcombine.high %v1072_v39, %v1072_v39  ;;  %v1079_v43 = vrot.slane %v1065_v40, %v1940_v7  ;;  %v353_v55 = vsel %vm252_vm1, %v1954_v12, 0  ;;  %v347_v58 = vsel %vm252_vm1, %v1949_v9, 0 }
  0x24   : > { %v1205_v46 = vcombine.high %v1197_v44, %v1197_v44  ;;  %v1204_v47 = vrot.slane %v1190_v45, %v1940_v7 }
  0x25   : > { %458 = vrot.lane.b32.xlu0 %v455_v16, %s1849_s7 }
  0x27   : > { %460 = vrot.lane.b32.xlu1 %v454_v18, %s1849_s7  ;;  %v1549_v18 = vld [vmem:[%s2164_s1 + $0xc] sm:$0xf]  ;;  %s2118_s7 = scalar_lea.hbm %s2165_s2, %s1720_s29 }
  0x29   : > { %581 = vrot.lane.b32.xlu0 %v572_v19, %s1850_s8 }
  0x2b   : > { %583 = vrot.lane.b32.xlu1 %v580_v21, %s1850_s8 }
  0x2d   : > { %585 = vrot.lane.b32.xlu0 %v579_v23, %s1850_s8  ;;  %s1396_s8 = scalar_lea.sflag [#allocation3], %s189_s22 }
  0x2f   : > { %706 = vrot.lane.b32.xlu1 %v697_v24, %s1851_s9 }
  0x31   : > { %708 = vrot.lane.b32.xlu0 %v705_v26, %s1851_s9  ;;  %v1553_v26 = vld [vmem:[%s2164_s1 + $0x10] sm:$0xf] }
  0x33   : > { %710 = vrot.lane.b32.xlu1 %v704_v28, %s1851_s9  ;;  %s1780_s9 = scalar_lea.vmem %s1419_s30, 384 }
  0x34   : > { %p1781_p11 = scmp.ne.s32.totalorder %s1419_s30, %s1780_s9 }
  0x35   : > { %831 = vrot.lane.b32.xlu0 %v822_v29, %s1852_s10 }
  0x36   : > { %p1782_p12 = pnand %p1781_p11, %p1920_p5 }
  0x37   : > { %833 = vrot.lane.b32.xlu1 %v830_v31, %s1852_s10 }
  0x38   : > { %p1783_p13 = pneg %p1782_p12 }
  0x39   : > { %835 = vrot.lane.b32.xlu0 %v829_v33, %s1852_s10  ;;  %s1856_s10 = smov [#allocation2]  }
  0x3b   : > { %956 = vrot.lane.b32.xlu1 %v947_v34, %s1853_s11  ;;  %v1557_v34 = vld [vmem:[%s2164_s1 + $0x14] sm:$0xf] }
  0x3d   : > { %958 = vrot.lane.b32.xlu0 %v955_v36, %s1853_s11 }
  0x3f   : > { %960 = vrot.lane.b32.xlu1 %v954_v38, %s1853_s11  ;;  %s1784_s11 = sshll.u32 %s1856_s10, 4  ;;  %s1785_s11 = int_to_ptr.vmem [resolvable:$false] %s1784_s11 }
  0x40   : > { %p1787_p0 = scmp.lt.s32.totalorder %s1419_s30, %s1785_s11 }
  0x41   : > { %1081 = vrot.lane.b32.xlu0 %v1072_v39, %s1854_s12 }
  0x43   : > { %1083 = vrot.lane.b32.xlu1 %v1080_v41, %s1854_s12 }
  0x45   : > { %1085 = vrot.lane.b32.xlu0 %v1079_v43, %s1854_s12  ;;  %s1786_s12 = scalar_lea.vmem %s1785_s11, 768 }
  0x46   : > { %p1788_p1 = scmp.lt.s32.totalorder %s1786_s12, %s1780_s9 }
  0x47   : > { %1206 = vrot.lane.b32.xlu1 %v1197_v44, %s1855_s13 }
  0x48   : > { %p1789_p2 = por %p1788_p1, %p1787_p0 }
  0x49   : > { %1208 = vrot.lane.b32.xlu0 %v1205_v46, %s1855_s13 }
  0x4a   : > { %p1790_p3 = pnand %p1789_p2, %p1783_p13 }
  0x4b   : > { %1210 = vrot.lane.b32.xlu1 %v1204_v47, %s1855_s13 }
  0x8f   : > { %v240_v48 = vpop.permute.xlu0 %239 }
  0x91   : > { %v244_v49 = vpop.permute.xlu1 %243 }
  0x92   : > { %v260_v50 = vsel %vm252_vm1, %v244_v49, 0 }
  0x93   : > { %v242_v51 = vpop.permute.xlu0 %241  ;;  %1595 = vmatpush3.bf16.msra.mxu1 %v260_v50 }
  0x94   : > { %v247_v53 = vsel %vm245_vm2, %v242_v51, %v244_v49  ;;  %v246_v54 = vsel %vm245_vm2, %v240_v48, %v242_v51  ;;  %1600 = vmatprep.subr.bf16.mxu1 %v1845_v3  ;;  %v1565_v49 = vld [vmem:[%s2164_s1 + $0x1c] sm:$0xf] }
  0x95   : > { %1539 = vmatprep.subr.msk.bf16.mxu0 %vm252_vm1, %v247_v53  ;;  %v254_v56 = vsel %vm252_vm1, %v246_v54, 0  ;;  %v457_v57 = vpop.permute.xlu1 %456  ;;  %v1569_v53 = vld [vmem:[%s2164_s1 + $0x20] sm:$0xf]  ;;  %v1316_v54 = vand.u32 127, %v227_v0 }
  0x96   : > { %263 = vmatpush1.bf16.msra.mxu0 %v254_v56  ;;  %1597 = vmatmul.mubr.msk.bf16.vlgmr.msra.gmra.mrb[0].mxu1 %vm248_vm3, %v1538_v52 }
  0x97   : > { %1542 = vmatprep.subr.msk.bf16.mxu0 %vm252_vm1, %v1958_v13  ;;  %1601 = vmatpush3.bf16.msra.mxu1 %v353_v55  ;;  %v459_v59 = vpop.permute.xlu0 %458  ;;  %v1318_v55 = vadd.s32 256, %v1316_v54  ;;  %v1317_v56 = vadd.s32 128, %v1316_v54 }
  0x98   : > { %1602 = vmatprep.mubr.msk.bf16.mxu1 %vm1846_vm0, %v1845_v3  ;;  %1606 = vmatprep.subr.bf16.mxu1 %v1845_v3  ;;  %v463_v1 = vsel %vm462_vm4, %v457_v57, %v459_v59 }
  0x99   : > { %1540 = vmatmul.mubr.msk.bf16.vlgmr.msra.gmra.mrb[0].mxu0 %vm248_vm3, %v1538_v52  ;;  %v461_v60 = vpop.permute.xlu1 %460  ;;  %v469_v7 = vsel %vm252_vm1, %v463_v1, 0 }
  0x9a   : > { %356 = vmatpush1.bf16.msra.mxu0 %v347_v58  ;;  %v464_v61 = vsel %vm462_vm4, %v459_v59, %v461_v60  ;;  %387 = vmatprep.mubr.bf16.mxu0 %v1847_v6  ;;  %v475_v2 = vsel %vm252_vm1, %v461_v60, 0  ;;  %v2093_v58 = vmul.u32.u64.low 3817748708, %v1316_v54  ;;  %v2094_v59 = vmul.u32.u64.high 3817748708, %v1316_v54, %v2093_v58 }
  0x9b   : > { %1546 = vmatprep.subr.msk.bf16.mxu0 %vm252_vm1, %v464_v61  ;;  %v582_v62 = vpop.permute.xlu0 %581  ;;  %vm1313_vm4 = vcmask 261120  }
  0x9d   : > { %v584_v4 = vpop.permute.xlu1 %583 }
  0x9e   : > { %v588_v11 = vsel %vm587_vm5, %v582_v62, %v584_v4  ;;  %v1325_v62 = vshrl.u32 %v2094_v59, 4 }
  0x9f   : > { %v586_v5 = vpop.permute.xlu0 %585  ;;  %v594_v15 = vsel %vm252_vm1, %v588_v11, 0 }
  0xa0   : > { %v589_v8 = vsel %vm587_vm5, %v584_v4, %v586_v5  ;;  %v600_v12 = vsel %vm252_vm1, %v586_v5, 0  ;;  %v1326_v1 = vmul.u32 18, %v1325_v62 }
  0xa1   : > { %v707_v9 = vpop.permute.xlu1 %706 }
  0xa2   : > { %1603 = vmatmul.mubr.msk.bf16.vlgmr.msra.gmra.mrb[0].mxu1 %vm248_vm3, %v219_v63  ;;  %v1327_v5 = vsub.s32 %v1316_v54, %v1326_v1 }
  0xa3   : > { %1607 = vmatpush3.bf16.msra.mxu1 %v475_v2  ;;  %1608 = vmatprep.mubr.msk.bf16.mxu1 %vm1846_vm0, %v1845_v3  ;;  %v709_v13 = vpop.permute.xlu0 %708 }
  0xa4   : > { %1612 = vmatprep.subr.bf16.mxu1 %v1845_v3  ;;  %v713_v19 = vsel %vm712_vm6, %v707_v9, %v709_v13  ;;  %vm1352_vm13 = vcmp.ne.s32.totalorder %v1327_v5, 0  ;;  %vm1355_vm14 = vcmp.lt.s32.totalorder %v1327_v5, 0  ;;  %v1361_v9 = vadd.s32 18, %v1327_v5 }
  0xa5   : > { %1543 = vmatmul.mubr.msk.bf16.vlgmr.msra.gmra.mrb[0].mxu0 %vm248_vm3, %v219_v63  ;;  %v711_v14 = vpop.permute.xlu1 %710  ;;  %v719_v23 = vsel %vm252_vm1, %v713_v19, 0  ;;  %vm1358_vm2 = vmand %vm1355_vm14, %vm1352_vm13 }
  0xa6   : > { %478 = vmatpush1.bf16.msra.mxu0 %v469_v7  ;;  %509 = vmatprep.mubr.bf16.mxu0 %v1847_v6  ;;  %v714_v16 = vsel %vm712_vm6, %v709_v13, %v711_v14  ;;  %v725_v20 = vsel %vm252_vm1, %v711_v14, 0 }
  0xa7   : > { %1550 = vmatprep.subr.msk.bf16.mxu0 %vm252_vm1, %v589_v8  ;;  %v832_v17 = vpop.permute.xlu0 %831 }
  0xa9   : > { %v834_v21 = vpop.permute.xlu1 %833 }
  0xaa   : > { %v838_v27 = vsel %vm837_vm7, %v832_v17, %v834_v21 }
  0xab   : > { %v836_v22 = vpop.permute.xlu0 %835  ;;  %v844_v31 = vsel %vm252_vm1, %v838_v27, 0 }
  0xac   : > { %v839_v24 = vsel %vm837_vm7, %v834_v21, %v836_v22  ;;  %v850_v28 = vsel %vm252_vm1, %v836_v22, 0 }
  0xad   : > { %v957_v25 = vpop.permute.xlu1 %956 }
  0xae   : > { %1609 = vmatmul.mubr.msk.bf16.vlgmr.msra.gmra.mrb[0].mxu1 %vm248_vm3, %v1545_v10 }
  0xaf   : > { %1613 = vmatpush3.bf16.msra.mxu1 %v600_v12  ;;  %1614 = vmatprep.mubr.msk.bf16.mxu1 %vm1846_vm0, %v1845_v3  ;;  %v959_v29 = vpop.permute.xlu0 %958  ;;  %v1364_v12 = vsel %vm1358_vm2, %v1361_v9, %v1327_v5 }
  0xb0   : > { %1618 = vmatprep.subr.bf16.mxu1 %v1845_v3  ;;  %v963_v35 = vsel %vm962_vm8, %v957_v25, %v959_v29  ;;  %vm1367_vm6 = vcmp.lt.s32.totalorder %v1364_v12, 16 }
  0xb1   : > { %1547 = vmatmul.mubr.msk.bf16.vlgmr.msra.gmra.mrb[0].mxu0 %vm248_vm3, %v1545_v10  ;;  %v961_v30 = vpop.permute.xlu1 %960  ;;  %v969_v39 = vsel %vm252_vm1, %v963_v35, 0 }
  0xb2   : > { %603 = vmatpush1.bf16.msra.mxu0 %v594_v15  ;;  %634 = vmatprep.mubr.bf16.mxu0 %v1847_v6  ;;  %v964_v32 = vsel %vm962_vm8, %v959_v29, %v961_v30  ;;  %v975_v36 = vsel %vm252_vm1, %v961_v30, 0 }
  0xb3   : > { %1554 = vmatprep.subr.msk.bf16.mxu0 %vm252_vm1, %v714_v16  ;;  %v1082_v33 = vpop.permute.xlu0 %1081 }
  0xb5   : > { %v1084_v37 = vpop.permute.xlu1 %1083 }
  0xb6   : > { %v1088_v43 = vsel %vm1087_vm9, %v1082_v33, %v1084_v37 }
  0xb7   : > { %v1086_v38 = vpop.permute.xlu0 %1085  ;;  %v1094_v47 = vsel %vm252_vm1, %v1088_v43, 0 }
  0xb8   : > { %v1089_v40 = vsel %vm1087_vm9, %v1084_v37, %v1086_v38  ;;  %v1100_v44 = vsel %vm252_vm1, %v1086_v38, 0 }
  0xb9   : > { %v1207_v41 = vpop.permute.xlu1 %1206 }
  0xba   : > { %1615 = vmatmul.mubr.msk.bf16.vlgmr.msra.gmra.mrb[0].mxu1 %vm248_vm3, %v1549_v18 }
  0xbb   : > { %1619 = vmatpush3.bf16.msra.mxu1 %v725_v20  ;;  %1620 = vmatprep.mubr.msk.bf16.mxu1 %vm1846_vm0, %v1845_v3  ;;  %v1209_v45 = vpop.permute.xlu0 %1208 }
  0xbc   : > { %1624 = vmatprep.subr.bf16.mxu1 %v1845_v3  ;;  %v1213_v50 = vsel %vm1212_vm10, %v1207_v41, %v1209_v45 }
  0xbd   : > { %1551 = vmatmul.mubr.msk.bf16.vlgmr.msra.gmra.mrb[0].mxu0 %vm248_vm3, %v1549_v18  ;;  %v1211_v46 = vpop.permute.xlu1 %1210  ;;  %v1219_v52 = vsel %vm252_vm1, %v1213_v50, 0 }
  0xbe   : > { %728 = vmatpush1.bf16.msra.mxu0 %v719_v23  ;;  %759 = vmatprep.mubr.bf16.mxu0 %v1847_v6  ;;  %v1214_v48 = vsel %vm1212_vm10, %v1209_v45, %v1211_v46  ;;  %v1225_v51 = vsel %vm252_vm1, %v1211_v46, 0 }
  0xbf   : > { %1558 = vmatprep.subr.msk.bf16.mxu0 %vm252_vm1, %v839_v24 }
  0xc6   : > { %1621 = vmatmul.mubr.msk.bf16.vlgmr.msra.gmra.mrb[0].mxu1 %vm248_vm3, %v1553_v26 }
  0xc7   : > { %1625 = vmatpush3.bf16.msra.mxu1 %v850_v28  ;;  %1626 = vmatprep.mubr.msk.bf16.mxu1 %vm1846_vm0, %v1845_v3 }
  0xc8   : > { %1630 = vmatprep.subr.bf16.mxu1 %v1845_v3 }
  0xc9   : > { %1555 = vmatmul.mubr.msk.bf16.vlgmr.msra.gmra.mrb[0].mxu0 %vm248_vm3, %v1553_v26 }
  0xca   : > { %853 = vmatpush1.bf16.msra.mxu0 %v844_v31  ;;  %884 = vmatprep.mubr.bf16.mxu0 %v1847_v6 }
  0xcb   : > { %1562 = vmatprep.subr.msk.bf16.mxu0 %vm252_vm1, %v964_v32 }
  0xd2   : > { %1627 = vmatmul.mubr.msk.bf16.vlgmr.msra.gmra.mrb[0].mxu1 %vm248_vm3, %v1557_v34 }
  0xd3   : > { %1631 = vmatpush3.bf16.msra.mxu1 %v975_v36  ;;  %1632 = vmatprep.mubr.msk.bf16.mxu1 %vm1846_vm0, %v1845_v3 }
  0xd4   : > { %1636 = vmatprep.subr.bf16.mxu1 %v1845_v3 }
  0xd5   : > { %1559 = vmatmul.mubr.msk.bf16.vlgmr.msra.gmra.mrb[0].mxu0 %vm248_vm3, %v1557_v34 }
  0xd6   : > { %978 = vmatpush1.bf16.msra.mxu0 %v969_v39  ;;  %1009 = vmatprep.mubr.bf16.mxu0 %v1847_v6 }
  0xd7   : > { %1566 = vmatprep.subr.msk.bf16.mxu0 %vm252_vm1, %v1089_v40 }
  0xde   : > { %1633 = vmatmul.mubr.msk.bf16.vlgmr.msra.gmra.mrb[0].mxu1 %vm248_vm3, %v1561_v42 }
  0xdf   : > { %1637 = vmatpush3.bf16.msra.mxu1 %v1100_v44  ;;  %1638 = vmatprep.mubr.msk.bf16.mxu1 %vm1846_vm0, %v1845_v3 }
  0xe0   : > { %1642 = vmatprep.subr.bf16.mxu1 %v1845_v3 }
  0xe1   : > { %1563 = vmatmul.mubr.msk.bf16.vlgmr.msra.gmra.mrb[0].mxu0 %vm248_vm3, %v1561_v42 }
  0xe2   : > { %1103 = vmatpush1.bf16.msra.mxu0 %v1094_v47  ;;  %1134 = vmatprep.mubr.bf16.mxu0 %v1847_v6 }
  0xe3   : > { %1570 = vmatprep.subr.msk.bf16.mxu0 %vm252_vm1, %v1214_v48 }
  0xea   : > { %1639 = vmatmul.mubr.msk.bf16.vlgmr.msra.gmra.mrb[0].mxu1 %vm248_vm3, %v1565_v49 }
  0xeb   : > { %1643 = vmatpush3.bf16.msra.mxu1 %v1225_v51  ;;  %1644 = vmatprep.mubr.msk.bf16.mxu1 %vm1846_vm0, %v1845_v3  ;;  %v2090_v57 = vmul.u32.u64.low 3817748708, %v1318_v55  ;;  %v2091_v3 = vmul.u32.u64.high 3817748708, %v1318_v55, %v2090_v57 }
  0xed   : > { %1567 = vmatmul.mubr.msk.bf16.vlgmr.msra.gmra.mrb[0].mxu0 %vm248_vm3, %v1565_v49  ;;  %v1347_v61 = vshrl.u32 %v2091_v3, 4 }
  0xee   : > { %1228 = vmatpush1.bf16.msra.mxu0 %v1219_v52  ;;  %1259 = vmatprep.mubr.bf16.mxu0 %v1847_v6  ;;  %v2096_v6 = vmul.u32.u64.low 3817748708, %v1317_v56  ;;  %v2097_v60 = vmul.u32.u64.high 3817748708, %v1317_v56, %v2096_v6 }
  0xef   : > { %v1348_v0 = vmul.u32 18, %v1347_v61 }
  0xf0   : > { %v1336_v63 = vshrl.u32 %v2097_v60, 4 }
  0xf1   : > { %v1349_v4 = vsub.s32 %v1318_v55, %v1348_v0 }
  0xf2   : > { %v1337_v2 = vmul.u32 18, %v1336_v63 }
  0xf3   : > { %vm1354_vm11 = vcmp.ne.s32.totalorder %v1349_v4, 0  ;;  %vm1357_vm12 = vcmp.lt.s32.totalorder %v1349_v4, 0  ;;  %v1363_v8 = vadd.s32 18, %v1349_v4 }
  0xf4   : > { %v1338_v7 = vsub.s32 %v1317_v56, %v1337_v2  ;;  %vm1360_vm15 = vmand %vm1357_vm12, %vm1354_vm11 }
  0xf5   : > { %v1366_v11 = vsel %vm1360_vm15, %v1363_v8, %v1349_v4 }
  0xf6   : > { %1645 = vmatmul.mubr.msk.bf16.vlgmr.msra.gmra.mrb[0].mxu1 %vm248_vm3, %v1569_v53  ;;  %vm1353_vm0 = vcmp.ne.s32.totalorder %v1338_v7, 0  ;;  %vm1356_vm1 = vcmp.lt.s32.totalorder %v1338_v7, 0  ;;  %v1362_v10 = vadd.s32 18, %v1338_v7  ;;  %vm1369_vm5 = vcmp.lt.s32.totalorder %v1366_v11, 16 }
  0xf9   : > { %1571 = vmatmul.mubr.msk.bf16.vlgmr.msra.gmra.mrb[0].mxu0 %vm248_vm3, %v1569_v53  ;;  %vm1359_vm3 = vmand %vm1356_vm1, %vm1353_vm0 }
  0xfa   : > { %v1365_v13 = vsel %vm1359_vm3, %v1362_v10, %v1338_v7 }
  0xfb   : > { %vm1368_vm7 = vcmp.lt.s32.totalorder %v1365_v13, 16 }
 0x1c9   : > { %v1302_v14 = vpop.f32.mrb[0].mxu1 }
 0x1ca   : > { %1314 = vst.msk [vmem:[%s2105_s28 + $0x10] sm:$0xff] %vm1313_vm4, %v1302_v14  ;;  %v1646_v15 = vpop.f32.mrb[1].mxu1  ;;  %v1378_v16 = vsel %vm1369_vm5, %v1302_v14, 0.0 }
 0x1cb   : > { %v1305_v17 = vpop.f32.mrb[2].mxu1  ;;  %v1388_v22 = vmul.f32 %v1378_v16, %v1378_v16  ;;  %v1380_v29 = vsel %vm1313_vm4, %v1378_v16, 0.0 }
 0x1cc   : > { %v1261_v18 = vpop.f32.mrb[0].mxu0  ;;  %v1647_v19 = vpop.f32.mrb[3].mxu1 }
 0x1cd   : > { %1311 = vst [vmem:[%s2105_s28] sm:$0xff] %v1261_v18  ;;  %v1376_v20 = vsel %vm1367_vm6, %v1261_v18, 0.0  ;;  %v1263_v21 = vpop.f32.mrb[1].mxu0  ;;  %v1390_v32 = vsel %vm1313_vm4, %v1388_v22, 0.0 }
 0x1ce   : > { %v1386_v23 = vmul.f32 %v1376_v20, %v1376_v20  ;;  %1312 = vst [vmem:[%s2105_s28 + $0x8] sm:$0xff] %v1263_v21  ;;  %v1377_v24 = vsel %vm1368_vm7, %v1263_v21, 0.0  ;;  %v1265_v25 = vpop.f32.mrb[2].mxu0 }
 0x1cf   : > { %v1379_v26 = vadd.f32 %v1377_v24, %v1376_v20  ;;  %v1387_v27 = vmul.f32 %v1377_v24, %v1377_v24  ;;  %v1266_v28 = vpop.f32.mrb[3].mxu0 }
 0x1d1   : > { %v1381_v30 = vadd.f32 %v1380_v29, %v1379_v26  ;;  %v1389_v31 = vadd.f32 %v1387_v27, %v1386_v23 }
 0x1d3   : > { %1382 = vadd.xlane.f32.xlu0 %v1381_v30  ;;  %v1391_v33 = vadd.f32 %v1390_v32, %v1389_v31 }
 0x1d5   : > { %1392 = vadd.xlane.f32.xlu1 %v1391_v33 }
 0x1d6   : > { %1793 = shalt.err (!%p1790_p3)
}
 0x1d7   : > { %s1794_s19 = scalar_lea.hbm %s2118_s7, 384  ;;  %s1798_s20 = scalar_lea.hbm %s2165_s2, 768 }
 0x1d8   : > { %p1795_p4 = scmp.ne.s32.totalorder %s2118_s7, %s1794_s19  ;;  %p1799_p9 = scmp.lt.u32.totalorder %s2118_s7, %s2165_s2 }
 0x1d9   : > { %p1800_p10 = scmp.lt.u32.totalorder %s1798_s20, %s1794_s19  ;;  %p1802_p12 = scmp.lt.u32.totalorder %s1794_s19, %s2118_s7 }
 0x1da   : > { %p1796_p7 = pnand %p1795_p4, %p1920_p5 }
 0x1db   : > { %p1801_p11 = por %p1800_p10, %p1799_p9 }
 0x1dc   : > { %p1797_p8 = pneg %p1796_p7 }
 0x1dd   : > { %p1803_p13 = por %p1802_p12, %p1801_p11 }
 0x1df   : > { %p1804_p0 = pnand %p1803_p13, %p1797_p8 }
 0x1e1   : > { %1807 = shalt.err (!%p1804_p0)
}
 0x1e2   : > { %1721 = dma.vmem_to_hbm [thread:$0]  (%p1920_p5), %s1419_s30, 384, %s2118_s7, %s1396_s8   ;;  %vm1384_vm8 = vcmask 7168  }
 0x1e3   : > { %s1536_s28 = sshll.u32 %s1933_s27, 3 }
 0x1e4   : > { %s212_s6 = scalar_lea.vmem %s2166_s3, %s1536_s28  ;;  %s216_s11 = scalar_lea.vmem %s2167_s4, %s1536_s28 }
 0x260   : > { %v1383_v34 = vpop.xlane.xlu0 %1382 }
 0x261   : > { %1385 = vst.msk [vmem:[%s212_s6] sm:$0xff] %vm1384_vm8, %v1383_v34 }
 0x262   : > { %v1393_v35 = vpop.xlane.xlu1 %1392 }
 0x263   : > { %1394 = vst.msk [vmem:[%s216_s11] sm:$0xff] %vm1384_vm8, %v1393_v35 }
 0x264 PF: > { %p1727_p1 = scmp.ge.s32.totalorder %s1842_s18, 2  ;;  %s1436_s25 = sand.u32 1, %s1830_s15  }
 0x265   : > { %s1437_s27 = scalar_lea.sflag [#allocation3], %s1436_s25 }
 0x266   : > { %p1724_p5 = pnand %p1727_p1, %p1924_p6 }
 0x268   : > { %1825 = dma.done.wait (!%p1724_p5), %s1437_s27, 384  }
 0x269   : > { %1827 = vsyncadd (!%p1724_p5), %s1437_s27, 4294966912  ;;  %p15_p2 = scmp.ge.s32.totalorder %s1907_s21, 4   ;;  %s2170_s15 = smov %s1834_s16 }
 0x26a   : > { %s2171_s16 = smov %s1838_s17  ;;  %s2172_s17 = smov %s1918_s24 }
 0x26b   : > { %s2173_s18 = smov %s1907_s21  ;;  %17 = sbr.rel (!%p15_p2) target bundleno = 3 (0x3), region = 95 }
 0x272   :  { %1456 = vsyncpa [#allocation3], 1 }
 0x273   :  { %1458 = vsyncpa [#allocation3 + $0x1], 1 }

</bundles_post_ra>
